<compile_context>
chip_gen: v6e
topology: v6e:2x2x1
jax: 0.10.0
libtpu: 0.0.40
codegen_flags: <defaults>
</compile_context>

<pallas_src>
import functools

import jax
import jax.numpy as jnp
from jax import lax
from jax.experimental import pallas as pl
from jax.experimental.pallas import tpu as pltpu


def _simclr_lse_kernel(zq_ref, zk_ref, out_ref, m_s, l_s, *,
                       tile_m, tile_n, n_valid, mask_pad_cols):
    i = pl.program_id(0)          # row-tile index   (parallel)
    j = pl.program_id(1)          # column-tile index (reduction, innermost)

    @pl.when(j == 0)
    def _init():
        m_s[...] = jnp.full(m_s.shape, -1e30, dtype=jnp.float32)
        l_s[...] = jnp.zeros(l_s.shape, dtype=jnp.float32)

    # (TM, TN) similarity tile: pre-normalized bf16 operands (1/T already
    # folded into the query side), transposed-RHS contraction, f32 MXU acc.
    sim = lax.dot_general(zq_ref[...], zk_ref[...],
                          dimension_numbers=(((1,), (1,)), ((), ())),
                          preferred_element_type=jnp.float32)

    row0 = i * tile_m
    col0 = j * tile_n

    def _online_update(s):
        m_prev = m_s[...]
        m_new = jnp.maximum(m_prev, jnp.max(s, axis=-1, keepdims=True))
        alpha = jnp.exp(m_prev - m_new)
        l_s[...] = alpha * l_s[...] + jnp.sum(jnp.exp(s - m_new), axis=-1,
                                              keepdims=True)
        m_s[...] = m_new

    # Only the (rare) tiles that intersect the global diagonal — and, when the
    # key rows were padded, tiles containing padded columns — pay for the
    # iota/compare/select.  Everything else takes the cheap path.
    diag_hit = (col0 < row0 + tile_m) & (col0 + tile_n > row0)
    if mask_pad_cols:
        need_mask = diag_hit | (col0 + tile_n > n_valid)
    else:
        need_mask = diag_hit

    @pl.when(need_mask)
    def _masked():
        r = lax.broadcasted_iota(jnp.int32, sim.shape, 0) + row0
        c = lax.broadcasted_iota(jnp.int32, sim.shape, 1) + col0
        if mask_pad_cols:
            bad = (r == c) | (c >= n_valid)
        else:
            bad = r == c
        _online_update(jnp.where(bad, -1e30, sim))

    @pl.when(jnp.logical_not(need_mask))
    def _unmasked():
        _online_update(sim)

    @pl.when(j == pl.num_programs(1) - 1)
    def _finalize():
        out_ref[...] = m_s[...] + jnp.log(l_s[...])   # per-row logsumexp (TM, 1)


def _largest_tile(n, cap, step):
    """Largest multiple of `step` that divides `n` and is <= min(cap, n)."""
    c = min(cap, n)
    c -= c % step
    while c >= step:
        if n % c == 0:
            return c
        c -= step
    return None


def simclr_loss(z_i, z_j, temperature):
    """Pallas TPU implementation of SimCLR_Loss.forward (returns scalar loss)."""
    assert z_i.shape == z_j.shape and z_i.ndim == 2
    B, D = z_i.shape
    N = 2 * B
    assert B % 8 == 0, "batch_size must be a multiple of 8 for the tiled TPU kernel"

    inv_temp = float(1.0 / float(temperature))

    # ---- O(N*D) preprocessing in plain XLA (amortized against the kernel's
    # ---- O(N^2/TM * D) streamed bytes). -----------------------------------
    z = jnp.concatenate([z_i, z_j], axis=0).astype(jnp.float32)          # (N, D)
    # TODO(synk): PyTorch CosineSimilarity clamps ||a||*||b|| at eps; clamping
    # each row's squared norm is identical for non-degenerate inputs.
    inv_norm = lax.rsqrt(jnp.maximum(jnp.sum(z * z, axis=-1, keepdims=True),
                                     1e-16))
    zn = z * inv_norm                                                    # unit rows, f32

    # Positive logit per row: cos(z_a, z_{(a+B) mod N}) / T  (f32, O(N*D)).
    pos = jnp.sum(zn * jnp.roll(zn, -B, axis=0), axis=-1) * inv_temp     # (N,)

    # Query operand: fold 1/T, cast to bf16.  Key operand: normalized bf16
    # (halves the HBM bytes of the dominant streamed input).
    zq = (zn * inv_temp).astype(jnp.bfloat16)
    zk = zn.astype(jnp.bfloat16)

    # Lane-align the feature dim (zero padding does not change dot products).
    d_pad = ((D + 127) // 128) * 128
    if d_pad != D:
        zq = jnp.pad(zq, ((0, 0), (0, d_pad - D)))
        zk = jnp.pad(zk, ((0, 0), (0, d_pad - D)))

    # Pad the key/column dimension to a multiple of 128 so tile_n keeps the
    # lanes full; padded columns are masked inside the kernel.
    n_kpad = ((N + 127) // 128) * 128
    if n_kpad != N:
        zk = jnp.pad(zk, ((0, n_kpad - N), (0, 0)))

    # Row tile divides B -> N // tile_m is always even (clean split across the
    # two v7x TensorCores).  Column tile is a multiple of 128; 1024 cap keeps
    # the bf16 key double-buffers + (TM, TN) f32 sim tile well inside v7x's
    # 64 MiB VMEM while still amortizing per-step pipeline overhead.
    tile_m = _largest_tile(B, 512, 8)
    tile_n = _largest_tile(n_kpad, 1024, 128)

    kernel = functools.partial(
        _simclr_lse_kernel,
        tile_m=tile_m,
        tile_n=tile_n,
        n_valid=N,
        mask_pad_cols=(n_kpad != N),
    )

    # NOTE: on v5e, if profiling shows the key DMA still exposed, add
    # pipeline_mode=pl.Buffered(3) on the key BlockSpec below.
    row_lse = pl.pallas_call(
        kernel,
        out_shape=jax.ShapeDtypeStruct((N, 1), jnp.float32),
        grid_spec=pltpu.PrefetchScalarGridSpec(
            num_scalar_prefetch=0,
            grid=(N // tile_m, n_kpad // tile_n),
            in_specs=[
                pl.BlockSpec((tile_m, d_pad), lambda i, j: (i, 0)),   # query rows (bf16)
                pl.BlockSpec((tile_n, d_pad), lambda i, j: (j, 0)),   # key rows (bf16, streamed)
            ],
            out_specs=pl.BlockSpec((tile_m, 1), lambda i, j: (i, 0)),
            scratch_shapes=[
                pltpu.VMEM((tile_m, 1), jnp.float32),   # running max
                pltpu.VMEM((tile_m, 1), jnp.float32),   # running sum
            ],
        ),
        compiler_params=pltpu.CompilerParams(
            dimension_semantics=("parallel", "arbitrary"),
            vmem_limit_bytes=48 * 1024 * 1024,   # headroom even on v7x (64 MiB)
        ),
    )(zq, zk)

    # Trivial O(N) reductions in plain JAX.
    return (jnp.sum(row_lse) - jnp.sum(pos)) / jnp.float32(N)


def _simclr_loss_ref(z_i, z_j, temperature):
    """Pure-JAX f32 reference for correctness checking."""
    B = z_i.shape[0]
    N = 2 * B
    z = jnp.concatenate([z_i, z_j], axis=0).astype(jnp.float32)
    norms = jnp.maximum(jnp.linalg.norm(z, axis=-1, keepdims=True), 1e-8)
    zn = z / norms
    sim = (zn @ zn.T) / temperature
    row = jnp.arange(N)[:, None]
    col = jnp.arange(N)[None, :]
    masked = jnp.where(row == col, -jnp.inf, sim)
    lse = jax.scipy.special.logsumexp(masked, axis=-1)
    pos = sim[jnp.arange(N), (jnp.arange(N) + B) % N]
    return jnp.sum(lse - pos) / N


if __name__ == "__main__":
    batch_size = 64
    feat_dim = 128
    temperature = 0.5

    key = jax.random.PRNGKey(0)
    k1, k2 = jax.random.split(key)
    z_i = jax.random.normal(k1, (batch_size, feat_dim), dtype=jnp.float32)
    z_j = jax.random.normal(k2, (batch_size, feat_dim), dtype=jnp.float32)

    loss = jax.block_until_ready(simclr_loss(z_i, z_j, temperature))
    ref = jax.block_until_ready(_simclr_loss_ref(z_i, z_j, temperature))

    # bf16 MXU operands (f32 accumulation) -> relaxed tolerance vs the f32 ref.
    assert jnp.allclose(loss, ref, rtol=1e-2, atol=1e-2), (loss, ref)

    print("KERNEL_OK")
</pallas_src>

<mosaic_0001>
module attributes {stable_mosaic.version = 11 : i64} {
  func.func @_simclr_lse_kernel(%arg0: i32, %arg1: i32, %arg2: memref<64x128xbf16, #tpu.memory_space<vmem>>, %arg3: memref<128x128xbf16, #tpu.memory_space<vmem>>, %arg4: memref<64x1xf32, #tpu.memory_space<vmem>>, %arg5: memref<64x1xf32, #tpu.memory_space<vmem>>, %arg6: memref<64x1xf32, #tpu.memory_space<vmem>>) attributes {dimension_semantics = [#tpu.dimension_semantics<parallel>, #tpu.dimension_semantics<arbitrary>], iteration_bounds = array<i64: 2, 1>, scalar_prefetch = 0 : i64, scratch_operands = 2 : i64, tpu.core_type = #tpu.core_type<tc>, window_params = [{transform_indices = @transform_0, window_bounds = array<i64: 64, 128>}, {transform_indices = @transform_1, window_bounds = array<i64: 128, 128>}, {transform_indices = @transform_2, window_bounds = array<i64: 64, 1>}]} {
    %c0_i32 = arith.constant 0 : i32
    %0 = arith.cmpi eq, %arg1, %c0_i32 : i32
    %1 = arith.extui %0 : i1 to i32
    %c0_i32_0 = arith.constant 0 : i32
    %2 = arith.cmpi ne, %1, %c0_i32_0 : i32
    scf.if %2 {
      %cst_10 = arith.constant -1.000000e+30 : f32
      %21 = vector.broadcast %cst_10 : f32 to vector<64x1xf32>
      %c0_11 = arith.constant 0 : index
      %c0_12 = arith.constant 0 : index
      %22 = vector.load %arg5[%c0_11, %c0_12] : memref<64x1xf32, #tpu.memory_space<vmem>>, vector<64x1xf32>
      tpu.vector_store %arg5[%c0_11, %c0_12], %21 {strides = array<i32>} : memref<64x1xf32, #tpu.memory_space<vmem>>, vector<64x1xf32>,
      %cst_13 = arith.constant 0.000000e+00 : f32
      %23 = vector.broadcast %cst_13 : f32 to vector<64x1xf32>
      %c0_14 = arith.constant 0 : index
      %c0_15 = arith.constant 0 : index
      %24 = vector.load %arg6[%c0_14, %c0_15] : memref<64x1xf32, #tpu.memory_space<vmem>>, vector<64x1xf32>
      tpu.vector_store %arg6[%c0_14, %c0_15], %23 {strides = array<i32>} : memref<64x1xf32, #tpu.memory_space<vmem>>, vector<64x1xf32>,
    } else {
    }
    %c0 = arith.constant 0 : index
    %c0_1 = arith.constant 0 : index
    %3 = vector.load %arg2[%c0, %c0_1] : memref<64x128xbf16, #tpu.memory_space<vmem>>, vector<64x128xbf16>
    %c0_2 = arith.constant 0 : index
    %c0_3 = arith.constant 0 : index
    %4 = vector.load %arg3[%c0_2, %c0_3] : memref<128x128xbf16, #tpu.memory_space<vmem>>, vector<128x128xbf16>
    %cst = arith.constant dense<0.000000e+00> : vector<64x128xf32>
    %5 = tpu.matmul %3, %4, %cst {dimension_numbers = #tpu.dot_dimension_numbers<[1], [1], [0], [0], [0, 0, 1, 0], [], []>} : vector<64x128xbf16>, vector<128x128xbf16>, vector<64x128xf32> -> vector<64x128xf32>
    %c64_i32 = arith.constant 64 : i32
    %6 = arith.muli %arg0, %c64_i32 : i32
    %c128_i32 = arith.constant 128 : i32
    %7 = arith.muli %arg1, %c128_i32 : i32
    %c64_i32_4 = arith.constant 64 : i32
    %8 = arith.addi %6, %c64_i32_4 : i32
    %9 = arith.cmpi slt, %7, %8 : i32
    %c128_i32_5 = arith.constant 128 : i32
    %10 = arith.addi %7, %c128_i32_5 : i32
    %11 = arith.cmpi sgt, %10, %6 : i32
    %12 = arith.andi %9, %11 : i1
    %13 = arith.extui %12 : i1 to i32
    %c0_i32_6 = arith.constant 0 : i32
    %14 = arith.cmpi ne, %13, %c0_i32_6 : i32
    scf.if %14 {
      %21 = tpu.iota {dimensions = array<i32: 0>} : vector<64x128xi32>
      %22 = vector.broadcast %6 : i32 to vector<64x128xi32>
      %23 = arith.addi %21, %22 : vector<64x128xi32>
      %24 = tpu.iota {dimensions = array<i32: 1>} : vector<64x128xi32>
      %25 = vector.broadcast %7 : i32 to vector<64x128xi32>
      %26 = arith.addi %24, %25 : vector<64x128xi32>
      %27 = arith.cmpi eq, %23, %26 : vector<64x128xi32>
      %cst_10 = arith.constant -1.000000e+30 : f32
      %28 = vector.broadcast %cst_10 : f32 to vector<64x128xf32>
      %29 = arith.select %27, %28, %5 : vector<64x128xi1>, vector<64x128xf32>
      %c0_11 = arith.constant 0 : index
      %c0_12 = arith.constant 0 : index
      %30 = vector.load %arg5[%c0_11, %c0_12] : memref<64x1xf32, #tpu.memory_space<vmem>>, vector<64x1xf32>
      %cst_13 = arith.constant dense<0xFF800000> : vector<64xf32>
      %31 = vector.multi_reduction <maximumf>, %29, %cst_13 [1] : vector<64x128xf32> to vector<64xf32>
      %32 = vector.shape_cast %31 : vector<64xf32> to vector<64x1xf32>
      %33 = arith.maximumf %30, %32 : vector<64x1xf32>
      %34 = arith.subf %30, %33 : vector<64x1xf32>
      %35 = math.exp %34 : vector<64x1xf32>
      %c0_14 = arith.constant 0 : index
      %c0_15 = arith.constant 0 : index
      %36 = vector.load %arg6[%c0_14, %c0_15] : memref<64x1xf32, #tpu.memory_space<vmem>>, vector<64x1xf32>
      %37 = arith.mulf %35, %36 : vector<64x1xf32>
      %38 = vector.broadcast %33 : vector<64x1xf32> to vector<64x128xf32>
      %39 = arith.subf %29, %38 : vector<64x128xf32>
      %40 = math.exp %39 : vector<64x128xf32>
      %cst_16 = arith.constant dense<0.000000e+00> : vector<64xf32>
      %41 = vector.multi_reduction <add>, %40, %cst_16 [1] : vector<64x128xf32> to vector<64xf32>
      %42 = vector.shape_cast %41 : vector<64xf32> to vector<64x1xf32>
      %43 = arith.addf %37, %42 : vector<64x1xf32>
      %c0_17 = arith.constant 0 : index
      %c0_18 = arith.constant 0 : index
      %44 = vector.load %arg6[%c0_17, %c0_18] : memref<64x1xf32, #tpu.memory_space<vmem>>, vector<64x1xf32>
      tpu.vector_store %arg6[%c0_17, %c0_18], %43 {strides = array<i32>} : memref<64x1xf32, #tpu.memory_space<vmem>>, vector<64x1xf32>,
      %c0_19 = arith.constant 0 : index
      %c0_20 = arith.constant 0 : index
      %45 = vector.load %arg5[%c0_19, %c0_20] : memref<64x1xf32, #tpu.memory_space<vmem>>, vector<64x1xf32>
      tpu.vector_store %arg5[%c0_19, %c0_20], %33 {strides = array<i32>} : memref<64x1xf32, #tpu.memory_space<vmem>>, vector<64x1xf32>,
    } else {
    }
    %true = arith.constant true
    %15 = arith.xori %12, %true : i1
    %16 = arith.extui %15 : i1 to i32
    %c0_i32_7 = arith.constant 0 : i32
    %17 = arith.cmpi ne, %16, %c0_i32_7 : i32
    scf.if %17 {
      %c0_10 = arith.constant 0 : index
      %c0_11 = arith.constant 0 : index
      %21 = vector.load %arg5[%c0_10, %c0_11] : memref<64x1xf32, #tpu.memory_space<vmem>>, vector<64x1xf32>
      %cst_12 = arith.constant dense<0xFF800000> : vector<64xf32>
      %22 = vector.multi_reduction <maximumf>, %5, %cst_12 [1] : vector<64x128xf32> to vector<64xf32>
      %23 = vector.shape_cast %22 : vector<64xf32> to vector<64x1xf32>
      %24 = arith.maximumf %21, %23 : vector<64x1xf32>
      %25 = arith.subf %21, %24 : vector<64x1xf32>
      %26 = math.exp %25 : vector<64x1xf32>
      %c0_13 = arith.constant 0 : index
      %c0_14 = arith.constant 0 : index
      %27 = vector.load %arg6[%c0_13, %c0_14] : memref<64x1xf32, #tpu.memory_space<vmem>>, vector<64x1xf32>
      %28 = arith.mulf %26, %27 : vector<64x1xf32>
      %29 = vector.broadcast %24 : vector<64x1xf32> to vector<64x128xf32>
      %30 = arith.subf %5, %29 : vector<64x128xf32>
      %31 = math.exp %30 : vector<64x128xf32>
      %cst_15 = arith.constant dense<0.000000e+00> : vector<64xf32>
      %32 = vector.multi_reduction <add>, %31, %cst_15 [1] : vector<64x128xf32> to vector<64xf32>
      %33 = vector.shape_cast %32 : vector<64xf32> to vector<64x1xf32>
      %34 = arith.addf %28, %33 : vector<64x1xf32>
      %c0_16 = arith.constant 0 : index
      %c0_17 = arith.constant 0 : index
      %35 = vector.load %arg6[%c0_16, %c0_17] : memref<64x1xf32, #tpu.memory_space<vmem>>, vector<64x1xf32>
      tpu.vector_store %arg6[%c0_16, %c0_17], %34 {strides = array<i32>} : memref<64x1xf32, #tpu.memory_space<vmem>>, vector<64x1xf32>,
      %c0_18 = arith.constant 0 : index
      %c0_19 = arith.constant 0 : index
      %36 = vector.load %arg5[%c0_18, %c0_19] : memref<64x1xf32, #tpu.memory_space<vmem>>, vector<64x1xf32>
      tpu.vector_store %arg5[%c0_18, %c0_19], %24 {strides = array<i32>} : memref<64x1xf32, #tpu.memory_space<vmem>>, vector<64x1xf32>,
    } else {
    }
    %c0_i32_8 = arith.constant 0 : i32
    %18 = arith.cmpi eq, %arg1, %c0_i32_8 : i32
    %19 = arith.extui %18 : i1 to i32
    %c0_i32_9 = arith.constant 0 : i32
    %20 = arith.cmpi ne, %19, %c0_i32_9 : i32
    scf.if %20 {
      %c0_10 = arith.constant 0 : index
      %c0_11 = arith.constant 0 : index
      %21 = vector.load %arg5[%c0_10, %c0_11] : memref<64x1xf32, #tpu.memory_space<vmem>>, vector<64x1xf32>
      %c0_12 = arith.constant 0 : index
      %c0_13 = arith.constant 0 : index
      %22 = vector.load %arg6[%c0_12, %c0_13] : memref<64x1xf32, #tpu.memory_space<vmem>>, vector<64x1xf32>
      %23 = math.log %22 : vector<64x1xf32>
      %24 = arith.addf %21, %23 : vector<64x1xf32>
      %c0_14 = arith.constant 0 : index
      %c0_15 = arith.constant 0 : index
      %25 = vector.load %arg4[%c0_14, %c0_15] : memref<64x1xf32, #tpu.memory_space<vmem>>, vector<64x1xf32>
      tpu.vector_store %arg4[%c0_14, %c0_15], %24 {strides = array<i32>} : memref<64x1xf32, #tpu.memory_space<vmem>>, vector<64x1xf32>,
    } else {
    }
    return
  }
  func.func @transform_0(%arg0: i32, %arg1: i32) -> (i32, i32) {
    %c0_i32 = arith.constant 0 : i32
    %c0_i32_0 = arith.constant 0 : i32
    return %arg0, %c0_i32 : i32, i32
  }
  func.func @transform_1(%arg0: i32, %arg1: i32) -> (i32, i32) {
    %c0_i32 = arith.constant 0 : i32
    %c0_i32_0 = arith.constant 0 : i32
    return %arg1, %c0_i32 : i32, i32
  }
  func.func @transform_2(%arg0: i32, %arg1: i32) -> (i32, i32) {
    %c0_i32 = arith.constant 0 : i32
    %c0_i32_0 = arith.constant 0 : i32
    return %arg0, %c0_i32 : i32, i32
  }
}

</mosaic_0001>

<bundles_post_ra>
// kernel: tpu_custom_call.1
= control target key start
LH: loop header
LB: loop body
LE: loop exit
PB: predicated region body
PF: predicated region fallthrough
CT: control target
= control target key end

     0   :  { %7 = vsyncpa [#allocation5], 0  ;;  %s1785_s0 = inlined_call_operand.hbm [shape: bf16[128,128], index: 0, kind: input, shape index: {}]   ;;  %s1786_s1 = inlined_call_operand.hbm [shape: bf16[128,128], index: 1, kind: input, shape index: {}]   ;;  %s1787_s2 = inlined_call_operand.vmem [shape: f32[128,1], index: 2, kind: output, shape index: {}]  }
   0x1   :  { %9 = vsyncpa [#allocation5 + $0x1], 0 }
   0x2   :  { %10 = vsyncpa [#allocation7], 0  ;;  %s1314_s9 = smov 0   ;;  %s1316_s10 = smov 0  }
   0x3   :  { %s1318_s11 = smov 0   ;;  %s1320_s12 = smov 0  }
   0x4   :  { %s1322_s13 = smov 0   ;;  %s1324_s14 = smov 0  }
   0x5 LB: > { %s930_s15 = sadd.s32 4294967295, %s1289_s14   ;;  %p48_p0 = scmp.ne.s32.totalorder %s1273_s10, %s1269_s9  ;;  %s1289_s14 = sphi %s1324_s14, %s16_s14   ;;  %s1285_s13 = sphi %s1322_s13, %s1798_s13   ;;  %s1281_s12 = sphi %s1320_s12, %s1797_s12   ;;  %s1277_s11 = sphi %s1318_s11, %s1796_s11   ;;  %s1273_s10 = sphi %s1316_s10, %s1795_s10   ;;  %s1269_s9 = sphi %s1314_s9, %s1794_s9  }
   0x6   : > { %p1344_p1 = scmp.eq.s32.totalorder %s930_s15, 0  ;;  %p932_p2 = scmp.ge.s32.totalorder %s1289_s14, 1 }
   0x7   : > { %p111_p3 = scmp.lt.s32.totalorder %s1289_s14, 3  ;;  %s1291_s19 = smov [#allocation6]  }
   0x8   : > { %p1352_p4 = por %p1344_p1, %p48_p0  ;;  %s126_s20 = sshll.u32 %s1291_s19, 4  ;;  %s127_s20 = int_to_ptr.vmem [resolvable:$true] %s126_s20 }
   0x9   : > { %p1356_p5 = pnand %p932_p2, %p111_p3  ;;  %s28_s22 = sadd.s32 1, %s1285_s13 }
   0xa   : > { %s1192_s23 = scalar_lea.vmem %s127_s20, 1024  ;;  %p1200_p12 = scmp.lt.s32.totalorder %s127_s20, %s127_s20 }
   0xb   : > { %p1019_p6 = pneg %p1356_p5  ;;  %p1193_p9 = scmp.ne.s32.totalorder %s127_s20, %s1192_s23 }
   0xc   : > { %p1201_p13 = scmp.lt.s32.totalorder %s1192_s23, %s1192_s23 }
   0xd   : > { %p1364_p7 = pnand %p1019_p6, %p1344_p1 }
   0xe   : > { %p1202_p0 = por %p1201_p13, %p1200_p12 }
   0xf   : > { %p1183_p8 = pneg %p1364_p7 }
  0x11   : > { %p1195_p10 = pnand %p1193_p9, %p1183_p8 }
  0x13   : > { %p1196_p11 = pneg %p1195_p10 }
  0x15   : > { %p1203_p2 = pnand %p1202_p0, %p1196_p11 }
  0x17   : > { %1206 = shalt.err (!%p1203_p2)
}
  0x18   : > { %s1292_s24 = smov 64   ;;  %s1293_s25 = smov 4  }
  0x19   : > { %1022 = dma.hbm_to_vmem [thread:$0]  (!%p1364_p7), %s1786_s1, 1024, %s127_s20, [#allocation7], %s1292_s24, %s1292_s24, %s1293_s25  }
  0x1a   : > { %p30_p3 = scmp.ge.s32.totalorder %s28_s22, 2  ;;  %s35_s28 = sadd.s32 1, %s1277_s11 }
  0x1b   : > { %p42_p6 = scmp.ne.s32.totalorder %s1277_s11, %s1273_s10  ;;  %p43_p8 = scmp.eq.s32.totalorder %s1289_s14, 0 }
  0x1c   : > { %s1800_s22 = smov (%p30_p3, %s28_s22), 0  ;;  %p1028_p10 = scmp.lt.s32.totalorder %s1289_s14, 2 }
  0x1d   : > { %p44_p9 = por %p43_p8, %p42_p6  ;;  %s32_s29 = ssub.s32 %s1285_s13, %s1800_s22 }
  0x1e   : > { %s140_s30 = sand.u32 1, %s1277_s11   ;;  %p33_p11 = scmp.eq.s32.totalorder %s32_s29, 0 }
  0x1f   : > { %s935_s3 = sshll.u32 %s140_s30, 5  ;;  %s960_s4 = sshll.u32 %s1285_s13, 9 }
  0x20   : > { %s1391_s5 = scalar_select %p33_p11, %s1277_s11, %s35_s28  }
  0x21   : > { %s150_s8 = scalar_lea.hbm %s1785_s0, %s960_s4  ;;  %s144_s9 = scalar_lea.vmem [#allocation4], %s935_s3 }
  0x22   : > { %s151_s15 = sshll.u32 %s144_s9, 4  ;;  %p1396_p7 = pnand %p1028_p10, %p44_p9  ;;  %s152_s15 = int_to_ptr.vmem [resolvable:$true] %s151_s15 }
  0x23   : > { %s141_s20 = scalar_lea.sflag [#allocation5], %s140_s30  ;;  %s1220_s21 = scalar_lea.vmem %s152_s15, 512 }
  0x24   : > { %p1209_p12 = pneg %p1396_p7  ;;  %p1221_p13 = scmp.ne.s32.totalorder %s152_s15, %s1220_s21 }
  0x25   : > { %s1294_s23 = smov [#allocation4]  }
  0x26   : > { %p1223_p0 = pnand %p1221_p13, %p1209_p12  ;;  %s1225_s26 = sshll.u32 %s1294_s23, 4  ;;  %s1226_s26 = int_to_ptr.vmem [resolvable:$false] %s1225_s26 }
  0x27   : > { %s1227_s27 = scalar_lea.vmem %s1226_s26, 1024  ;;  %p1228_p3 = scmp.lt.s32.totalorder %s152_s15, %s1226_s26 }
  0x28   : > { %p1224_p2 = pneg %p1223_p0  ;;  %p1229_p6 = scmp.lt.s32.totalorder %s1227_s27, %s1220_s21 }
  0x2a   : > { %p1230_p8 = por %p1229_p6, %p1228_p3 }
  0x2c   : > { %p1231_p9 = pnand %p1230_p8, %p1224_p2 }
  0x2e   : > { %1234 = shalt.err (!%p1231_p9)
}
  0x2f   : > { %1026 = dma.hbm_to_vmem [thread:$0]  (!%p1396_p7), %s150_s8, 512, %s152_s15, %s141_s20, %s1292_s24, %s1292_s24, %s1293_s25  }
  0x30   : > { %163 = sbr.rel (%p1356_p5) target bundleno = 1258 (0x4ea), region = 28  ;;  %s165_s28 = sand.u32 (!%p1356_p5), 1, %s1273_s10  }
  0x31   : > { %s939_s29 = sshll.u32 (!%p1356_p5), %s165_s28, 5  ;;  %s166_s30 = scalar_lea.sflag (!%p1356_p5), [#allocation5], %s165_s28 }
  0x32   : > { %s1410_s3 = scalar_lea.vmem (!%p1356_p5), [#allocation4], %s939_s29 }
  0x35   : > { %1260 = dma.done.wait (%p1352_p4), %s166_s30, 512  }
  0x36   : > { %1262 = vsyncadd (%p1352_p4), %s166_s30, 4294966784 }
  0x37   : > { %1264 = dma.done.wait (%p1344_p1), [#allocation7], 1024  }
  0x38   : > { %1266 = vsyncadd (%p1344_p1), [#allocation7], 4294966272  ;;  %vm207_vm0 = vcmask 7168   ;;  %v1295_v0 = vmov -1e+30   ;;  %v1296_v1 = vmov 0.0  }
  0x39   : > { %208 = vst.msk [vmem:[#allocation2] sm:$0xff] %vm207_vm0, %v1295_v0  ;;  %209 = vst.msk [vmem:[#allocation2 + $0x8] sm:$0xff] %vm207_vm0, %v1295_v0  ;;  %s941_s16 = sshll.u32 %s1281_s12, 3  ;;  %v1085_v2 = vld [vmem:[#allocation6 + $0x38] sm:$0xff]   ;;  %v1086_v3 = vld [vmem:[#allocation6 + $0x30] sm:$0xff]   ;;  %s955_s4 = sshll.u32 %s1281_s12, 6 }
  0x3a   : > { %210 = vst.msk [vmem:[#allocation2 + $0x10] sm:$0xff] %vm207_vm0, %v1295_v0  ;;  %211 = vst.msk [vmem:[#allocation2 + $0x18] sm:$0xff] %vm207_vm0, %v1295_v0  ;;  %p197_p1 = scmp.lt.s32.totalorder %s941_s16, 15  ;;  %973 = vmatprep.subr.bf16.mxu0 %v1085_v2  ;;  %997 = vmatprep.subr.bf16.mxu1 %v1085_v2  ;;  %v1087_v4 = vld [vmem:[#allocation6 + $0x28] sm:$0xff]   ;;  %v1093_v5 = vld [vmem:[%s1410_s3] sm:$0xff]   ;;  %s387_s6 = sadd.s32 64, %s955_s4 }
  0x3b   : > { %212 = vst.msk [vmem:[#allocation2 + $0x20] sm:$0xff] %vm207_vm0, %v1295_v0  ;;  %213 = vst.msk [vmem:[#allocation2 + $0x28] sm:$0xff] %vm207_vm0, %v1295_v0  ;;  %974 = vmatpush3.bf16.xpose.msra.mxu0 %v1085_v2  ;;  %1005 = vmatpush3.bf16.xpose.msra.mxu1 %v1085_v2  ;;  %v1094_v6 = vld [vmem:[%s1410_s3 + $0x10] sm:$0xff]   ;;  %v1088_v7 = vld [vmem:[#allocation6 + $0x20] sm:$0xff]   ;;  %p956_p4 = scmp.gt.s32.totalorder %s387_s6, 0  ;;  %p957_p5 = scmp.lt.s32.totalorder %s955_s4, 128 }
  0x3c   : > { %214 = vst.msk [vmem:[#allocation2 + $0x30] sm:$0xff] %vm207_vm0, %v1295_v0  ;;  %215 = vst.msk [vmem:[#allocation2 + $0x38] sm:$0xff] %vm207_vm0, %v1295_v0  ;;  %s1802_s16 = smov (!%p197_p1, %s941_s16), 15  ;;  %975 = vmatprep.subr.bf16.mxu0 %v1086_v3  ;;  %998 = vmatprep.subr.bf16.mxu1 %v1086_v3  ;;  %v1089_v8 = vld [vmem:[#allocation6 + $0x18] sm:$0xff]   ;;  %v1090_v9 = vld [vmem:[#allocation6 + $0x10] sm:$0xff]  }
  0x3d   : > { %216 = vst.msk [vmem:[#allocation3] sm:$0xff] %vm207_vm0, %v1296_v1  ;;  %217 = vst.msk [vmem:[#allocation3 + $0x8] sm:$0xff] %vm207_vm0, %v1296_v1  ;;  %s942_s17 = sshll.u32 %s1802_s16, 3  ;;  %989 = vmatprep.mubr.bf16.mxu0 %v1093_v5  ;;  %993 = vmatprep.mubr.bf16.mxu1 %v1094_v6  ;;  %v1091_v10 = vld [vmem:[#allocation6 + $0x8] sm:$0xff]   ;;  %v1092_v11 = vld [vmem:[#allocation6] sm:$0xff]   ;;  %p1447_p10 = pnand %p957_p5, %p956_p4 }
  0x3e   : > { %218 = vst.msk [vmem:[#allocation3 + $0x10] sm:$0xff] %vm207_vm0, %v1296_v1  ;;  %219 = vst.msk [vmem:[#allocation3 + $0x18] sm:$0xff] %vm207_vm0, %v1296_v1  ;;  %s1440_s25 = scalar_lea.vmem %s1787_s2, %s942_s17  ;;  %v1095_v12 = vld [vmem:[%s1410_s3 + $0x8] sm:$0xff]   ;;  %v1096_v13 = vld [vmem:[%s1410_s3 + $0x18] sm:$0xff]  }
  0x3f   : > { %220 = vst.msk [vmem:[#allocation3 + $0x20] sm:$0xff] %vm207_vm0, %v1296_v1  ;;  %221 = vst.msk [vmem:[#allocation3 + $0x28] sm:$0xff] %vm207_vm0, %v1296_v1 }
  0x40   : > { %222 = vst.msk [vmem:[#allocation3 + $0x30] sm:$0xff] %vm207_vm0, %v1296_v1  ;;  %223 = vst.msk [vmem:[#allocation3 + $0x38] sm:$0xff] %vm207_vm0, %v1296_v1 }
  0x43   : > { %976 = vmatpush3.bf16.xpose.msra.mxu0 %v1086_v3  ;;  %1006 = vmatpush3.bf16.xpose.msra.mxu1 %v1086_v3 }
  0x44   : > { %977 = vmatprep.subr.bf16.mxu0 %v1087_v4  ;;  %999 = vmatprep.subr.bf16.mxu1 %v1087_v4 }
  0x4b   : > { %978 = vmatpush3.bf16.xpose.msra.mxu0 %v1087_v4  ;;  %1007 = vmatpush3.bf16.xpose.msra.mxu1 %v1087_v4 }
  0x4c   : > { %979 = vmatprep.subr.bf16.mxu0 %v1088_v7  ;;  %1000 = vmatprep.subr.bf16.mxu1 %v1088_v7 }
  0x53   : > { %980 = vmatpush3.bf16.xpose.msra.mxu0 %v1088_v7  ;;  %1008 = vmatpush3.bf16.xpose.msra.mxu1 %v1088_v7 }
  0x54   : > { %981 = vmatprep.subr.bf16.mxu0 %v1089_v8  ;;  %1001 = vmatprep.subr.bf16.mxu1 %v1089_v8 }
  0x5b   : > { %982 = vmatpush3.bf16.xpose.msra.mxu0 %v1089_v8  ;;  %1009 = vmatpush3.bf16.xpose.msra.mxu1 %v1089_v8 }
  0x5c   : > { %983 = vmatprep.subr.bf16.mxu0 %v1090_v9  ;;  %1002 = vmatprep.subr.bf16.mxu1 %v1090_v9 }
  0x63   : > { %984 = vmatpush3.bf16.xpose.msra.mxu0 %v1090_v9  ;;  %1010 = vmatpush3.bf16.xpose.msra.mxu1 %v1090_v9 }
  0x64   : > { %985 = vmatprep.subr.bf16.mxu0 %v1091_v10  ;;  %1003 = vmatprep.subr.bf16.mxu1 %v1091_v10 }
  0x6b   : > { %986 = vmatpush3.bf16.xpose.msra.mxu0 %v1091_v10  ;;  %1011 = vmatpush3.bf16.xpose.msra.mxu1 %v1091_v10 }
  0x6c   : > { %987 = vmatprep.subr.bf16.mxu0 %v1092_v11  ;;  %1004 = vmatprep.subr.bf16.mxu1 %v1092_v11 }
  0x73   : > { %988 = vmatpush3.bf16.xpose.msra.mxu0 %v1092_v11  ;;  %1012 = vmatpush3.bf16.xpose.msra.mxu1 %v1092_v11 }
  0x7a   : > { %990 = vmatmul.mubr.bf16.vlgmr.msra.gmra.mxu0 %v1095_v12  ;;  %994 = vmatmul.mubr.bf16.vlgmr.msra.gmra.mxu1 %v1096_v13 }
 0x13a   : > { %v1451_v14 = vpop.f32.mrf.mxu0  ;;  %v1453_v15 = vpop.f32.mrf.mxu1 }
 0x13c   : > { %v1455_v16 = vpop.f32.mrf.mxu0  ;;  %v1457_v17 = vpop.f32.mrf.mxu1  ;;  %394 = sbr.rel (%p1447_p10) target bundleno = 780 (0x30c), region = 44 }
 0x13e   : > { %v1459_v18 = vpop.f32.mrf.mxu0  ;;  %v1461_v19 = vpop.f32.mrf.mxu1 }
 0x140   : > { %v1463_v20 = vpop.f32.mrf.mxu0  ;;  %v1465_v21 = vpop.f32.mrf.mxu1 }
 0x141   : > { %v395_v22 = vlaneseq  ;;  %v404_v23 = vstv %s955_s4  ;;  %v1297_v49 = vmov 0   ;;  %v1501_v50 = vld [vmem:[#allocation2] sm:$0xff]  ;;  %v1503_v52 = vld [vmem:[#allocation2 + $0x10] sm:$0xff]  ;;  %v1508_v54 = vld [vmem:[#allocation2 + $0x8] sm:$0xff] }
 0x142   : > { %1097 = vset.pattern.permute.xlu0 %v1297_v49  ;;  %1098 = vset.pattern.permute.xlu1 %v1297_v49  ;;  %v1518_v59 = vld [vmem:[#allocation2 + $0x18] sm:$0xff]  ;;  %v1527_v63 = vld [vmem:[#allocation2 + $0x20] sm:$0xff]  ;;  %v1537_v3 = vld [vmem:[#allocation2 + $0x28] sm:$0xff] }
 0x143   : > { %v396_v24 = vshrl.u32 %v395_v22, 7  ;;  %v414_v25 = vand.u32 127, %v395_v22  ;;  %v1546_v7 = vld [vmem:[#allocation2 + $0x30] sm:$0xff]  ;;  %v1556_v11 = vld [vmem:[#allocation2 + $0x38] sm:$0xff] }
 0x145   : > { %v405_v26 = vadd.s32 %v404_v23, %v396_v24  ;;  %v397_v27 = vadd.s32 8, %v396_v24  ;;  %v398_v28 = vadd.s32 16, %v396_v24  ;;  %v399_v29 = vadd.s32 24, %v396_v24 }
 0x146   : > { %v400_v30 = vadd.s32 32, %v396_v24  ;;  %v401_v31 = vadd.s32 40, %v396_v24  ;;  %v402_v32 = vadd.s32 48, %v396_v24  ;;  %v403_v38 = vadd.s32 56, %v396_v24 }
 0x147   : > { %vm417_vm1 = vcmp.eq.s32.totalorder %v405_v26, %v414_v25  ;;  %v406_v33 = vadd.s32 %v404_v23, %v397_v27  ;;  %v407_v34 = vadd.s32 %v404_v23, %v398_v28  ;;  %v408_v35 = vadd.s32 %v404_v23, %v399_v29 }
 0x148   : > { %v1470_v36 = vsel %vm417_vm1, -1e+30, %v1455_v16  ;;  %v409_v37 = vadd.s32 %v404_v23, %v400_v30  ;;  %v410_v39 = vadd.s32 %v404_v23, %v401_v31  ;;  %v411_v42 = vadd.s32 %v404_v23, %v402_v32 }
 0x149   : > { %441 = vmax.xlane.f32.xlu0 %v1470_v36  ;;  %vm418_vm2 = vcmp.eq.s32.totalorder %v406_v33, %v414_v25  ;;  %vm419_vm3 = vcmp.eq.s32.totalorder %v407_v34, %v414_v25  ;;  %vm420_vm4 = vcmp.eq.s32.totalorder %v408_v35, %v414_v25  ;;  %v412_v44 = vadd.s32 %v404_v23, %v403_v38 }
 0x14a   : > { %v1474_v40 = vsel %vm418_vm2, -1e+30, %v1463_v20  ;;  %v1477_v41 = vsel %vm419_vm3, -1e+30, %v1451_v14  ;;  %vm421_vm5 = vcmp.eq.s32.totalorder %v409_v37, %v414_v25  ;;  %v1481_v43 = vsel %vm420_vm4, -1e+30, %v1459_v18 }
 0x14b   : > { %445 = vmax.xlane.f32.xlu1 %v1477_v41  ;;  %vm422_vm6 = vcmp.eq.s32.totalorder %v410_v39, %v414_v25  ;;  %v1485_v45 = vsel %vm421_vm5, -1e+30, %v1457_v17  ;;  %vm423_vm7 = vcmp.eq.s32.totalorder %v411_v42, %v414_v25  ;;  %vm424_vm8 = vcmp.eq.s32.totalorder %v412_v44, %v414_v25 }
 0x14c   : > { %v1489_v46 = vsel %vm422_vm6, -1e+30, %v1465_v21  ;;  %v1493_v47 = vsel %vm423_vm7, -1e+30, %v1453_v15  ;;  %v1497_v48 = vsel %vm424_vm8, -1e+30, %v1461_v19 }
 0x14d   : > { %443 = vmax.xlane.f32.xlu0 %v1474_v40 }
 0x14f   : > { %447 = vmax.xlane.f32.xlu1 %v1481_v43 }
 0x151   : > { %449 = vmax.xlane.f32.xlu0 %v1485_v45 }
 0x153   : > { %451 = vmax.xlane.f32.xlu1 %v1489_v46 }
 0x155   : > { %453 = vmax.xlane.f32.xlu0 %v1493_v47 }
 0x157   : > { %455 = vmax.xlane.f32.xlu1 %v1497_v48 }
 0x1d2   : > { %v442_v51 = vpop.xlane.xlu0 %441 }
 0x1d3   : > { %v1506_v53 = vmax.f32 %v1501_v50, %v442_v51 }
 0x1d4   : > { %v446_v55 = vpop.xlane.xlu1 %445 }
 0x1d5   : > { %v465_v56 = vsub.f32 %v1501_v50, %v1506_v53  ;;  %602 = vst.msk [vmem:[#allocation2] sm:$0xff] %vm207_vm0, %v1506_v53  ;;  %507 = vperm.xlu0 %1097, %v1506_v53   ;;  %v1516_v57 = vmax.f32 %v1503_v52, %v446_v55 }
 0x1d6   : > { %v444_v58 = vpop.xlane.xlu0 %443 }
 0x1d7   : > { %v1521_v60 = vmax.f32 %v1508_v54, %v444_v58  ;;  %v467_v61 = vsub.f32 %v1503_v52, %v1516_v57  ;;  %604 = vst.msk [vmem:[#allocation2 + $0x10] sm:$0xff] %vm207_vm0, %v1516_v57 }
 0x1d8   : > { %v448_v62 = vpop.xlane.xlu1 %447 }
 0x1d9   : > { %v466_v0 = vsub.f32 %v1508_v54, %v1521_v60  ;;  %603 = vst.msk [vmem:[#allocation2 + $0x8] sm:$0xff] %vm207_vm0, %v1521_v60  ;;  %512 = vperm.xlu1 %1098, %v1521_v60   ;;  %v1535_v1 = vmax.f32 %v1518_v59, %v448_v62 }
 0x1da   : > { %v450_v2 = vpop.xlane.xlu0 %449 }
 0x1db   : > { %v468_v4 = vsub.f32 %v1518_v59, %v1535_v1  ;;  %605 = vst.msk [vmem:[#allocation2 + $0x18] sm:$0xff] %vm207_vm0, %v1535_v1  ;;  %v1544_v5 = vmax.f32 %v1527_v63, %v450_v2 }
 0x1dc   : > { %v452_v6 = vpop.xlane.xlu1 %451 }
 0x1dd   : > { %517 = vperm.xlu1 %1098, %v1516_v57   ;;  %v469_v8 = vsub.f32 %v1527_v63, %v1544_v5  ;;  %606 = vst.msk [vmem:[#allocation2 + $0x20] sm:$0xff] %vm207_vm0, %v1544_v5  ;;  %v1554_v9 = vmax.f32 %v1537_v3, %v452_v6 }
 0x1de   : > { %v454_v10 = vpop.xlane.xlu0 %453 }
 0x1df   : > { %v470_v12 = vsub.f32 %v1537_v3, %v1554_v9  ;;  %607 = vst.msk [vmem:[#allocation2 + $0x28] sm:$0xff] %vm207_vm0, %v1554_v9  ;;  %v1563_v13 = vmax.f32 %v1546_v7, %v454_v10  ;;  %v481_v50 = vmul.f32 1.442695, %v469_v8 }
 0x1e0   : > { %v456_v22 = vpop.xlane.xlu1 %455 }
 0x1e1   : > { %522 = vperm.xlu1 %1098, %v1535_v1   ;;  %v471_v23 = vsub.f32 %v1546_v7, %v1563_v13  ;;  %608 = vst.msk [vmem:[#allocation2 + $0x30] sm:$0xff] %vm207_vm0, %v1563_v13  ;;  %v1571_v24 = vmax.f32 %v1556_v11, %v456_v22  ;;  %v483_v54 = vmul.f32 1.442695, %v470_v12 }
 0x1e3   : > { %v472_v25 = vsub.f32 %v1556_v11, %v1571_v24  ;;  %609 = vst.msk [vmem:[#allocation2 + $0x38] sm:$0xff] %vm207_vm0, %v1571_v24  ;;  %v485_v59 = vmul.f32 1.442695, %v471_v23 }
 0x1e5   : > { %527 = vperm.xlu1 %1098, %v1544_v5   ;;  %v491_v5 = vld [vmem:[#allocation3 + $0x10] sm:$0xff]  ;;  %v487_v3 = vmul.f32 1.442695, %v472_v25  ;;  %v494_v25 = vld [vmem:[#allocation3 + $0x28] sm:$0xff] }
 0x1e9   : > { %532 = vperm.xlu1 %1098, %v1554_v9  }
 0x1ed   : > { %537 = vperm.xlu1 %1098, %v1563_v13  }
 0x1f1   : > { %542 = vperm.xlu1 %1098, %v1571_v24  }
 0x250   : > { %v508_v26 = vpop.permute.xlu0 %507 }
 0x251   : > { %v545_v27 = vsub.f32 %v1470_v36, %v508_v26 }
 0x253   : > { %v553_v28 = vmul.f32 1.442695, %v545_v27 }
 0x254   : > { %v513_v29 = vpop.permute.xlu1 %512 }
 0x255   : > { %1099 = vpow2.f32 %v553_v28  ;;  %v546_v30 = vsub.f32 %v1474_v40, %v513_v29  ;;  %v477_v28 = vmul.f32 1.442695, %v467_v61  ;;  %v479_v29 = vmul.f32 1.442695, %v468_v4  ;;  %v490_v61 = vld [vmem:[#allocation3 + $0x8] sm:$0xff] }
 0x257   : > { %v555_v31 = vmul.f32 1.442695, %v546_v30 }
 0x258   : > { %v518_v32 = vpop.permute.xlu1 %517 }
 0x259   : > { %1101 = vpow2.f32 %v555_v31  ;;  %v547_v33 = vsub.f32 %v1477_v41, %v518_v32  ;;  %v492_v31 = vld [vmem:[#allocation3 + $0x18] sm:$0xff] }
 0x25b   : > { %v557_v34 = vmul.f32 1.442695, %v547_v33  ;;  %v493_v33 = vld [vmem:[#allocation3 + $0x20] sm:$0xff] }
 0x25c   : > { %v523_v35 = vpop.permute.xlu1 %522 }
 0x25d   : > { %1103 = vpow2.f32 %v557_v34  ;;  %v548_v37 = vsub.f32 %v1481_v43, %v523_v35 }
 0x25f   : > { %v559_v38 = vmul.f32 1.442695, %v548_v37 }
 0x260   : > { %v528_v39 = vpop.permute.xlu1 %527 }
 0x261   : > { %1105 = vpow2.f32 %v559_v38  ;;  %v549_v36 = vsub.f32 %v1485_v45, %v528_v39 }
 0x262   : > { %v1100_v42 = vpop.eup %1099 }
 0x263   : > { %v561_v44 = vmul.f32 1.442695, %v549_v36  ;;  %569 = vadd.xlane.f32.xlu1 %v1100_v42  ;;  %v495_v42 = vld [vmem:[#allocation3 + $0x30] sm:$0xff] }
 0x264   : > { %v533_v49 = vpop.permute.xlu1 %532 }
 0x265   : > { %1107 = vpow2.f32 %v561_v44  ;;  %v550_v40 = vsub.f32 %v1489_v46, %v533_v49 }
 0x266   : > { %v1102_v51 = vpop.eup %1101 }
 0x267   : > { %v563_v55 = vmul.f32 1.442695, %v550_v40  ;;  %571 = vadd.xlane.f32.xlu0 %v1102_v51 }
 0x268   : > { %v538_v41 = vpop.permute.xlu1 %537 }
 0x269   : > { %1109 = vpow2.f32 %v563_v55  ;;  %v551_v58 = vsub.f32 %v1493_v47, %v538_v41  ;;  %v473_v47 = vmul.f32 1.442695, %v465_v56  ;;  %v489_v56 = vld [vmem:[#allocation3] sm:$0xff]  ;;  %v496_v55 = vld [vmem:[#allocation3 + $0x38] sm:$0xff] }
 0x26a   : > { %v1104_v43 = vpop.eup %1103 }
 0x26b   : > { %v565_v62 = vmul.f32 1.442695, %v551_v58  ;;  %573 = vadd.xlane.f32.xlu0 %v1104_v43 }
 0x26c   : > { %v543_v2 = vpop.permute.xlu1 %542 }
 0x26d   : > { %1111 = vpow2.f32 %v565_v62  ;;  %v552_v45 = vsub.f32 %v1497_v48, %v543_v2  ;;  %v475_v48 = vmul.f32 1.442695, %v466_v0 }
 0x26e   : > { %v1106_v6 = vpop.eup %1105 }
 0x26f   : > { %v567_v10 = vmul.f32 1.442695, %v552_v45  ;;  %575 = vadd.xlane.f32.xlu1 %v1106_v6 }
 0x271   : > { %1113 = vpow2.f32 %v567_v10 }
 0x272   : > { %v1108_v22 = vpop.eup %1107  ;;  %1115 = vpow2.f32 %v473_v47 }
 0x273   : > { %577 = vadd.xlane.f32.xlu0 %v1108_v22  ;;  %1117 = vpow2.f32 %v475_v48 }
 0x274   : > { %1119 = vpow2.f32 %v477_v28 }
 0x275   : > { %1121 = vpow2.f32 %v479_v29 }
 0x276   : > { %v1110_v46 = vpop.eup %1109  ;;  %1123 = vpow2.f32 %v481_v50 }
 0x277   : > { %579 = vadd.xlane.f32.xlu1 %v1110_v46  ;;  %1125 = vpow2.f32 %v483_v54 }
 0x278   : > { %1127 = vpow2.f32 %v485_v59 }
 0x279   : > { %1129 = vpow2.f32 %v487_v3 }
 0x27a   : > { %v1112_v26 = vpop.eup %1111 }
 0x27b   : > { %581 = vadd.xlane.f32.xlu0 %v1112_v26 }
 0x27e   : > { %v1114_v27 = vpop.eup %1113 }
 0x27f   : > { %583 = vadd.xlane.f32.xlu1 %v1114_v27  ;;  %v1116_v53 = vpop.eup %1115 }
 0x280   : > { %v497_v60 = vmul.f32 %v1116_v53, %v489_v56  ;;  %v1118_v52 = vpop.eup %1117 }
 0x281   : > { %v498_v63 = vmul.f32 %v1118_v52, %v490_v61  ;;  %v1120_v1 = vpop.eup %1119 }
 0x282   : > { %v499_v9 = vmul.f32 %v1120_v1, %v491_v5  ;;  %v1122_v12 = vpop.eup %1121 }
 0x283   : > { %v500_v13 = vmul.f32 %v1122_v12, %v492_v31  ;;  %v1124_v23 = vpop.eup %1123 }
 0x284   : > { %v501_v35 = vmul.f32 %v1124_v23, %v493_v33  ;;  %v1126_v11 = vpop.eup %1125 }
 0x285   : > { %v502_v38 = vmul.f32 %v1126_v11, %v494_v25  ;;  %v1128_v39 = vpop.eup %1127 }
 0x286   : > { %v503_v49 = vmul.f32 %v1128_v39, %v495_v42  ;;  %v1130_v40 = vpop.eup %1129 }
 0x287   : > { %v504_v58 = vmul.f32 %v1130_v40, %v496_v55 }
 0x2ec   : > { %v570_v57 = vpop.xlane.xlu1 %569 }
 0x2ed   : > { %v585_v0 = vadd.f32 %v570_v57, %v497_v60 }
 0x2ef   : > { %594 = vst.msk [vmem:[#allocation3] sm:$0xff] %vm207_vm0, %v585_v0 }
 0x2f0   : > { %v572_v4 = vpop.xlane.xlu0 %571 }
 0x2f1   : > { %v586_v8 = vadd.f32 %v572_v4, %v498_v63 }
 0x2f3   : > { %595 = vst.msk [vmem:[#allocation3 + $0x8] sm:$0xff] %vm207_vm0, %v586_v8 }
 0x2f4   : > { %v574_v30 = vpop.xlane.xlu0 %573 }
 0x2f5   : > { %v587_v7 = vadd.f32 %v574_v30, %v499_v9 }
 0x2f7   : > { %596 = vst.msk [vmem:[#allocation3 + $0x10] sm:$0xff] %vm207_vm0, %v587_v7 }
 0x2f8   : > { %v576_v32 = vpop.xlane.xlu1 %575 }
 0x2f9   : > { %v588_v34 = vadd.f32 %v576_v32, %v500_v13 }
 0x2fb   : > { %597 = vst.msk [vmem:[#allocation3 + $0x18] sm:$0xff] %vm207_vm0, %v588_v34 }
 0x2fc   : > { %v578_v24 = vpop.xlane.xlu0 %577 }
 0x2fd   : > { %v589_v37 = vadd.f32 %v578_v24, %v501_v35 }
 0x2ff   : > { %598 = vst.msk [vmem:[#allocation3 + $0x20] sm:$0xff] %vm207_vm0, %v589_v37 }
 0x300   : > { %v580_v36 = vpop.xlane.xlu1 %579 }
 0x301   : > { %v590_v44 = vadd.f32 %v580_v36, %v502_v38 }
 0x303   : > { %599 = vst.msk [vmem:[#allocation3 + $0x28] sm:$0xff] %vm207_vm0, %v590_v44 }
 0x304   : > { %v582_v51 = vpop.xlane.xlu0 %581 }
 0x305   : > { %v591_v41 = vadd.f32 %v582_v51, %v503_v49 }
 0x307   : > { %600 = vst.msk [vmem:[#allocation3 + $0x30] sm:$0xff] %vm207_vm0, %v591_v41 }
 0x308   : > { %v584_v43 = vpop.xlane.xlu1 %583 }
 0x309   : > { %v592_v62 = vadd.f32 %v584_v43, %v504_v58 }
 0x30b   : > { %601 = vst.msk [vmem:[#allocation3 + $0x38] sm:$0xff] %vm207_vm0, %v592_v62 }
 0x30c PF: > { %612 = sbr.rel (!%p1447_p10) target bundleno = 1231 (0x4cf), region = 48  ;;  %621 = vmax.xlane.f32.xlu0 (%p1447_p10), %v1455_v16  ;;  %625 = vmax.xlane.f32.xlu1 (%p1447_p10), %v1451_v14  ;;  %v1298_v2 = vmov (%p1447_p10), 0   ;;  %v1631_v45 = vld [vmem:[#allocation2] sm:$0xff] (%p1447_p10)  ;;  %v1633_v6 = vld [vmem:[#allocation2 + $0x10] sm:$0xff] (%p1447_p10)  ;;  %v1641_v27 = vld [vmem:[#allocation2 + $0x8] sm:$0xff] (%p1447_p10) }
 0x30d   : > { %1131 = vset.pattern.permute.xlu0 (%p1447_p10), %v1298_v2  ;;  %1132 = vset.pattern.permute.xlu1 (%p1447_p10), %v1298_v2  ;;  %v1643_v47 = vld [vmem:[#allocation2 + $0x18] sm:$0xff] (%p1447_p10)  ;;  %v1660_v54 = vld [vmem:[#allocation2 + $0x20] sm:$0xff] (%p1447_p10)  ;;  %v1662_v60 = vld [vmem:[#allocation2 + $0x28] sm:$0xff] (%p1447_p10) }
 0x30e   : > { %v1679_v1 = vld [vmem:[#allocation2 + $0x30] sm:$0xff] (%p1447_p10)  ;;  %v1681_v4 = vld [vmem:[#allocation2 + $0x38] sm:$0xff] (%p1447_p10) }
 0x310   : > { %623 = vmax.xlane.f32.xlu0 (%p1447_p10), %v1463_v20  ;;  %627 = vmax.xlane.f32.xlu1 (%p1447_p10), %v1459_v18 }
 0x314   : > { %629 = vmax.xlane.f32.xlu0 %v1457_v17  ;;  %631 = vmax.xlane.f32.xlu1 %v1465_v21 }
 0x318   : > { %633 = vmax.xlane.f32.xlu0 %v1453_v15  ;;  %635 = vmax.xlane.f32.xlu1 %v1461_v19 }
 0x395   : > { %v622_v10 = vpop.xlane.xlu0 %621  ;;  %v626_v22 = vpop.xlane.xlu1 %625 }
 0x396   : > { %v1636_v46 = vmax.f32 %v1631_v45, %v622_v10  ;;  %v1639_v26 = vmax.f32 %v1633_v6, %v626_v22 }
 0x398   : > { %v645_v48 = vsub.f32 %v1631_v45, %v1636_v46  ;;  %782 = vst.msk [vmem:[#allocation2] sm:$0xff] %vm207_vm0, %v1636_v46  ;;  %687 = vperm.xlu0 %1131, %v1636_v46   ;;  %v647_v28 = vsub.f32 %v1633_v6, %v1639_v26  ;;  %784 = vst.msk [vmem:[#allocation2 + $0x10] sm:$0xff] %vm207_vm0, %v1639_v26 }
 0x399   : > { %v624_v29 = vpop.xlane.xlu0 %623  ;;  %v628_v50 = vpop.xlane.xlu1 %627 }
 0x39a   : > { %v1655_v53 = vmax.f32 %v1641_v27, %v624_v29  ;;  %v1658_v56 = vmax.f32 %v1643_v47, %v628_v50  ;;  %v657_v29 = vmul.f32 1.442695, %v647_v28  ;;  %v670_v28 = vld [vmem:[#allocation3 + $0x8] sm:$0xff] }
 0x39c   : > { %v646_v52 = vsub.f32 %v1641_v27, %v1655_v53  ;;  %783 = vst.msk [vmem:[#allocation2 + $0x8] sm:$0xff] %vm207_vm0, %v1655_v53  ;;  %692 = vperm.xlu1 %1132, %v1655_v53   ;;  %v648_v57 = vsub.f32 %v1643_v47, %v1658_v56  ;;  %785 = vst.msk [vmem:[#allocation2 + $0x18] sm:$0xff] %vm207_vm0, %v1658_v56 }
 0x39d   : > { %v630_v61 = vpop.xlane.xlu0 %629  ;;  %v632_v0 = vpop.xlane.xlu1 %631 }
 0x39e   : > { %v1674_v59 = vmax.f32 %v1660_v54, %v630_v61  ;;  %v1677_v63 = vmax.f32 %v1662_v60, %v632_v0  ;;  %v659_v50 = vmul.f32 1.442695, %v648_v57  ;;  %v671_v61 = vld [vmem:[#allocation3 + $0x10] sm:$0xff] }
 0x3a0   : > { %697 = vperm.xlu1 %1132, %v1639_v26   ;;  %v649_v5 = vsub.f32 %v1660_v54, %v1674_v59  ;;  %786 = vst.msk [vmem:[#allocation2 + $0x20] sm:$0xff] %vm207_vm0, %v1674_v59  ;;  %v650_v8 = vsub.f32 %v1662_v60, %v1677_v63  ;;  %787 = vst.msk [vmem:[#allocation2 + $0x28] sm:$0xff] %vm207_vm0, %v1677_v63 }
 0x3a1   : > { %v634_v3 = vpop.xlane.xlu0 %633  ;;  %v636_v9 = vpop.xlane.xlu1 %635 }
 0x3a2   : > { %v1693_v12 = vmax.f32 %v1679_v1, %v634_v3  ;;  %v1696_v30 = vmax.f32 %v1681_v4, %v636_v9  ;;  %v661_v45 = vmul.f32 1.442695, %v649_v5  ;;  %v663_v27 = vmul.f32 1.442695, %v650_v8  ;;  %v672_v8 = vld [vmem:[#allocation3 + $0x18] sm:$0xff] }
 0x3a4   : > { %702 = vperm.xlu1 %1132, %v1658_v56   ;;  %v651_v31 = vsub.f32 %v1679_v1, %v1693_v12  ;;  %788 = vst.msk [vmem:[#allocation2 + $0x30] sm:$0xff] %vm207_vm0, %v1693_v12  ;;  %v652_v7 = vsub.f32 %v1681_v4, %v1696_v30  ;;  %789 = vst.msk [vmem:[#allocation2 + $0x38] sm:$0xff] %vm207_vm0, %v1696_v30 }
 0x3a6   : > { %v665_v47 = vmul.f32 1.442695, %v651_v31  ;;  %v667_v60 = vmul.f32 1.442695, %v652_v7  ;;  %v673_v31 = vld [vmem:[#allocation3 + $0x20] sm:$0xff]  ;;  %v674_v7 = vld [vmem:[#allocation3 + $0x28] sm:$0xff] }
 0x3a8   : > { %707 = vperm.xlu1 %1132, %v1674_v59  }
 0x3ac   : > { %712 = vperm.xlu1 %1132, %v1677_v63  }
 0x3b0   : > { %717 = vperm.xlu1 %1132, %v1693_v12  }
 0x3b4   : > { %722 = vperm.xlu1 %1132, %v1696_v30  }
 0x413   : > { %v688_v13 = vpop.permute.xlu0 %687 }
 0x414   : > { %v725_v23 = vsub.f32 %v1455_v16, %v688_v13 }
 0x416   : > { %v733_v32 = vmul.f32 1.442695, %v725_v23 }
 0x417   : > { %v693_v33 = vpop.permute.xlu1 %692 }
 0x418   : > { %1133 = vpow2.f32 %v733_v32  ;;  %v726_v34 = vsub.f32 %v1463_v20, %v693_v33 }
 0x41a   : > { %v735_v35 = vmul.f32 1.442695, %v726_v34 }
 0x41b   : > { %v698_v11 = vpop.permute.xlu1 %697 }
 0x41c   : > { %1135 = vpow2.f32 %v735_v35  ;;  %v727_v24 = vsub.f32 %v1451_v14, %v698_v11  ;;  %v675_v11 = vld [vmem:[#allocation3 + $0x30] sm:$0xff] }
 0x41e   : > { %v737_v25 = vmul.f32 1.442695, %v727_v24 }
 0x41f   : > { %v703_v37 = vpop.permute.xlu1 %702 }
 0x420   : > { %1137 = vpow2.f32 %v737_v25  ;;  %v728_v38 = vsub.f32 %v1459_v18, %v703_v37 }
 0x422   : > { %v739_v39 = vmul.f32 1.442695, %v728_v38 }
 0x423   : > { %v708_v36 = vpop.permute.xlu1 %707 }
 0x424   : > { %1139 = vpow2.f32 %v739_v39  ;;  %v729_v16 = vsub.f32 %v1457_v17, %v708_v36  ;;  %v676_v39 = vld [vmem:[#allocation3 + $0x38] sm:$0xff] }
 0x425   : > { %v1134_v42 = vpop.eup %1133 }
 0x426   : > { %v741_v44 = vmul.f32 1.442695, %v729_v16  ;;  %749 = vadd.xlane.f32.xlu1 %v1134_v42 }
 0x427   : > { %v713_v49 = vpop.permute.xlu1 %712 }
 0x428   : > { %1141 = vpow2.f32 %v741_v44  ;;  %v730_v20 = vsub.f32 %v1465_v21, %v713_v49 }
 0x429   : > { %v1136_v40 = vpop.eup %1135 }
 0x42a   : > { %v743_v51 = vmul.f32 1.442695, %v730_v20  ;;  %751 = vadd.xlane.f32.xlu0 %v1136_v40 }
 0x42b   : > { %v718_v14 = vpop.permute.xlu1 %717 }
 0x42c   : > { %1143 = vpow2.f32 %v743_v51  ;;  %v731_v55 = vsub.f32 %v1453_v15, %v718_v14  ;;  %v653_v15 = vmul.f32 1.442695, %v645_v48  ;;  %v669_v48 = vld [vmem:[#allocation3] sm:$0xff] }
 0x42d   : > { %v1138_v18 = vpop.eup %1137 }
 0x42e   : > { %v745_v41 = vmul.f32 1.442695, %v731_v55  ;;  %753 = vadd.xlane.f32.xlu0 %v1138_v18 }
 0x42f   : > { %v723_v58 = vpop.permute.xlu1 %722 }
 0x430   : > { %1145 = vpow2.f32 %v745_v41  ;;  %v732_v17 = vsub.f32 %v1461_v19, %v723_v58  ;;  %v655_v19 = vmul.f32 1.442695, %v646_v52 }
 0x431   : > { %v1140_v43 = vpop.eup %1139 }
 0x432   : > { %v747_v62 = vmul.f32 1.442695, %v732_v17  ;;  %755 = vadd.xlane.f32.xlu1 %v1140_v43 }
 0x434   : > { %1147 = vpow2.f32 %v747_v62 }
 0x435   : > { %v1142_v2 = vpop.eup %1141  ;;  %1149 = vpow2.f32 %v653_v15 }
 0x436   : > { %757 = vadd.xlane.f32.xlu0 %v1142_v2  ;;  %1151 = vpow2.f32 %v655_v19 }
 0x437   : > { %1153 = vpow2.f32 %v657_v29 }
 0x438   : > { %1155 = vpow2.f32 %v659_v50 }
 0x439   : > { %v1144_v21 = vpop.eup %1143  ;;  %1157 = vpow2.f32 %v661_v45 }
 0x43a   : > { %759 = vadd.xlane.f32.xlu1 %v1144_v21  ;;  %1159 = vpow2.f32 %v663_v27 }
 0x43b   : > { %1161 = vpow2.f32 %v665_v47 }
 0x43c   : > { %1163 = vpow2.f32 %v667_v60 }
 0x43d   : > { %v1146_v10 = vpop.eup %1145 }
 0x43e   : > { %761 = vadd.xlane.f32.xlu0 %v1146_v10 }
 0x441   : > { %v1148_v22 = vpop.eup %1147 }
 0x442   : > { %763 = vadd.xlane.f32.xlu1 %v1148_v22  ;;  %v1150_v46 = vpop.eup %1149 }
 0x443   : > { %v677_v53 = vmul.f32 %v1150_v46, %v669_v48  ;;  %v1152_v6 = vpop.eup %1151 }
 0x444   : > { %v678_v56 = vmul.f32 %v1152_v6, %v670_v28  ;;  %v1154_v54 = vpop.eup %1153 }
 0x445   : > { %v679_v59 = vmul.f32 %v1154_v54, %v671_v61  ;;  %v1156_v63 = vpop.eup %1155 }
 0x446   : > { %v680_v3 = vmul.f32 %v1156_v63, %v672_v8  ;;  %v1158_v9 = vpop.eup %1157 }
 0x447   : > { %v681_v23 = vmul.f32 %v1158_v9, %v673_v31  ;;  %v1160_v4 = vpop.eup %1159 }
 0x448   : > { %v682_v33 = vmul.f32 %v1160_v4, %v674_v7  ;;  %v1162_v34 = vpop.eup %1161 }
 0x449   : > { %v683_v25 = vmul.f32 %v1162_v34, %v675_v11  ;;  %v1164_v37 = vpop.eup %1163 }
 0x44a   : > { %v684_v16 = vmul.f32 %v1164_v37, %v676_v39 }
 0x4af   : > { %v750_v26 = vpop.xlane.xlu1 %749 }
 0x4b0   : > { %v765_v52 = vadd.f32 %v750_v26, %v677_v53 }
 0x4b2   : > { %774 = vst.msk [vmem:[#allocation3] sm:$0xff] %vm207_vm0, %v765_v52 }
 0x4b3   : > { %v752_v57 = vpop.xlane.xlu0 %751 }
 0x4b4   : > { %v766_v0 = vadd.f32 %v752_v57, %v678_v56 }
 0x4b6   : > { %775 = vst.msk [vmem:[#allocation3 + $0x8] sm:$0xff] %vm207_vm0, %v766_v0 }
 0x4b7   : > { %v754_v5 = vpop.xlane.xlu0 %753 }
 0x4b8   : > { %v767_v1 = vadd.f32 %v754_v5, %v679_v59 }
 0x4ba   : > { %776 = vst.msk [vmem:[#allocation3 + $0x10] sm:$0xff] %vm207_vm0, %v767_v1 }
 0x4bb   : > { %v756_v12 = vpop.xlane.xlu1 %755 }
 0x4bc   : > { %v768_v13 = vadd.f32 %v756_v12, %v680_v3 }
 0x4be   : > { %777 = vst.msk [vmem:[#allocation3 + $0x18] sm:$0xff] %vm207_vm0, %v768_v13 }
 0x4bf   : > { %v758_v30 = vpop.xlane.xlu0 %757 }
 0x4c0   : > { %v769_v32 = vadd.f32 %v758_v30, %v681_v23 }
 0x4c2   : > { %778 = vst.msk [vmem:[#allocation3 + $0x20] sm:$0xff] %vm207_vm0, %v769_v32 }
 0x4c3   : > { %v760_v35 = vpop.xlane.xlu1 %759 }
 0x4c4   : > { %v770_v24 = vadd.f32 %v760_v35, %v682_v33 }
 0x4c6   : > { %779 = vst.msk [vmem:[#allocation3 + $0x28] sm:$0xff] %vm207_vm0, %v770_v24 }
 0x4c7   : > { %v762_v38 = vpop.xlane.xlu0 %761 }
 0x4c8   : > { %v771_v36 = vadd.f32 %v762_v38, %v683_v25 }
 0x4ca   : > { %780 = vst.msk [vmem:[#allocation3 + $0x30] sm:$0xff] %vm207_vm0, %v771_v36 }
 0x4cb   : > { %v764_v42 = vpop.xlane.xlu1 %763 }
 0x4cc   : > { %v772_v44 = vadd.f32 %v764_v42, %v684_v16 }
 0x4ce   : > { %781 = vst.msk [vmem:[#allocation3 + $0x38] sm:$0xff] %vm207_vm0, %v772_v44 }
 0x4cf PF: > { %v801_v49 = vld [vmem:[#allocation3] sm:$0xff]  ;;  %v802_v20 = vld [vmem:[#allocation3 + $0x8] sm:$0xff]  ;;  %v803_v40 = vld [vmem:[#allocation3 + $0x10] sm:$0xff] }
 0x4d0   : > { %1165 = vlog2.f32 %v801_v49  ;;  %v804_v51 = vld [vmem:[#allocation3 + $0x18] sm:$0xff]  ;;  %v805_v14 = vld [vmem:[#allocation3 + $0x20] sm:$0xff]  ;;  %v806_v55 = vld [vmem:[#allocation3 + $0x28] sm:$0xff] }
 0x4d1   : > { %1167 = vlog2.f32 %v802_v20  ;;  %v807_v18 = vld [vmem:[#allocation3 + $0x30] sm:$0xff]  ;;  %v793_v17 = vld [vmem:[#allocation2] sm:$0xff]  ;;  %v794_v2 = vld [vmem:[#allocation2 + $0x8] sm:$0xff] }
 0x4d2   : > { %1169 = vlog2.f32 %v803_v40  ;;  %v795_v22 = vld [vmem:[#allocation2 + $0x10] sm:$0xff]  ;;  %v796_v50 = vld [vmem:[#allocation2 + $0x18] sm:$0xff]  ;;  %v797_v27 = vld [vmem:[#allocation2 + $0x20] sm:$0xff] }
 0x4d3   : > { %1171 = vlog2.f32 %v804_v51  ;;  %v798_v28 = vld [vmem:[#allocation2 + $0x28] sm:$0xff]  ;;  %v799_v54 = vld [vmem:[#allocation2 + $0x30] sm:$0xff]  ;;  %v800_v60 = vld [vmem:[#allocation2 + $0x38] sm:$0xff] }
 0x4d4   : > { %1173 = vlog2.f32 %v805_v14 }
 0x4d5   : > { %v808_v41 = vld [vmem:[#allocation3 + $0x38] sm:$0xff]  ;;  %1175 = vlog2.f32 %v806_v55 }
 0x4d6   : > { %1177 = vlog2.f32 %v807_v18 }
 0x4d7   : > { %1179 = vlog2.f32 %v808_v41 }
 0x4dd   : > { %v1166_v58 = vpop.eup %1165 }
 0x4de   : > { %v1168_v43 = vpop.eup %1167  ;;  %v810_v62 = vmul.f32 0.6931472, %v1166_v58 }
 0x4df   : > { %v1170_v21 = vpop.eup %1169  ;;  %v812_v10 = vmul.f32 0.6931472, %v1168_v43 }
 0x4e0   : > { %v1172_v15 = vpop.eup %1171  ;;  %v825_v19 = vadd.f32 %v810_v62, %v793_v17  ;;  %v814_v29 = vmul.f32 0.6931472, %v1170_v21 }
 0x4e1   : > { %v1174_v45 = vpop.eup %1173  ;;  %v826_v46 = vadd.f32 %v812_v10, %v794_v2  ;;  %v816_v48 = vmul.f32 0.6931472, %v1172_v15 }
 0x4e2   : > { %v1176_v53 = vpop.eup %1175  ;;  %834 = vst.msk [vmem:[%s1440_s25] sm:$0xff] %vm207_vm0, %v825_v19  ;;  %v827_v6 = vadd.f32 %v814_v29, %v795_v22  ;;  %v818_v26 = vmul.f32 0.6931472, %v1174_v45 }
 0x4e3   : > { %v1178_v52 = vpop.eup %1177  ;;  %835 = vst.msk [vmem:[%s1440_s25 + $0x8] sm:$0xff] %vm207_vm0, %v826_v46  ;;  %v828_v47 = vadd.f32 %v816_v48, %v796_v50  ;;  %v820_v56 = vmul.f32 0.6931472, %v1176_v53 }
 0x4e4   : > { %v1180_v57 = vpop.eup %1179  ;;  %836 = vst.msk [vmem:[%s1440_s25 + $0x10] sm:$0xff] %vm207_vm0, %v827_v6  ;;  %v829_v61 = vadd.f32 %v818_v26, %v797_v27  ;;  %v822_v0 = vmul.f32 0.6931472, %v1178_v52 }
 0x4e5   : > { %837 = vst.msk [vmem:[%s1440_s25 + $0x18] sm:$0xff] %vm207_vm0, %v828_v47  ;;  %v830_v59 = vadd.f32 %v820_v56, %v798_v28  ;;  %v824_v63 = vmul.f32 0.6931472, %v1180_v57 }
 0x4e6   : > { %838 = vst.msk [vmem:[%s1440_s25 + $0x20] sm:$0xff] %vm207_vm0, %v829_v61  ;;  %v831_v5 = vadd.f32 %v822_v0, %v799_v54 }
 0x4e7   : > { %839 = vst.msk [vmem:[%s1440_s25 + $0x28] sm:$0xff] %vm207_vm0, %v830_v59  ;;  %v832_v8 = vadd.f32 %v824_v63, %v800_v60 }
 0x4e8   : > { %840 = vst.msk [vmem:[%s1440_s25 + $0x30] sm:$0xff] %vm207_vm0, %v831_v5 }
 0x4e9   : > { %841 = vst.msk [vmem:[%s1440_s25 + $0x38] sm:$0xff] %vm207_vm0, %v832_v8 }
 0x4ea PF: > { %s16_s14 = sadd.s32 1, %s1289_s14   ;;  %s1794_s9 = smov %s1273_s10 }
 0x4eb   : > { %p13_p11 = scmp.ge.s32.totalorder %s16_s14, 4   ;;  %s1795_s10 = smov %s1277_s11 }
 0x4ec   : > { %s1796_s11 = smov %s1391_s5  ;;  %s1797_s12 = smov %s1285_s13 }
 0x4ed   : > { %s1798_s13 = smov %s1800_s22  ;;  %15 = sbr.rel (!%p13_p11) target bundleno = 5 (0x5), region = 89 }
 0x4f2   :  { %864 = vsyncpa [#allocation5], 1 }
 0x4f3   :  { %866 = vsyncpa [#allocation5 + $0x1], 1 }
 0x4f4   :  { %867 = vsyncpa [#allocation7], 1 }

</bundles_post_ra>
